<compile_context>
chip_gen: v6e
topology: v6e:2x2x1
jax: 0.10.0
libtpu: 0.0.40
codegen_flags: <defaults>
</compile_context>

<pallas_src>
import functools

import jax
import jax.numpy as jnp
from jax.experimental import pallas as pl
from jax.experimental.pallas import tpu as pltpu

LN_EPS = 1e-5  # nn.LayerNorm default eps


def _pos_encoder_kernel(x_ref, pos_ref, gamma_ref, beta_ref, o_ref):
    # x_ref / o_ref: (TS, H)  current sequence tile of the current batch elem
    # pos_ref:       (TS, H)  positional embeddings for this sequence tile
    # gamma_ref:     (1, H)   LayerNorm weight
    # beta_ref:      (1, H)   LayerNorm bias
    v = x_ref[...].astype(jnp.float32) + pos_ref[...].astype(jnp.float32)

    inv_h = jnp.float32(1.0 / v.shape[-1])
    s1 = jnp.sum(v, axis=-1, keepdims=True)          # (TS, 1)
    s2 = jnp.sum(v * v, axis=-1, keepdims=True)      # (TS, 1)
    mean = s1 * inv_h
    var = jnp.maximum(s2 * inv_h - mean * mean, 0.0)
    inv_std = jax.lax.rsqrt(var + LN_EPS)

    gamma = gamma_ref[...].astype(jnp.float32)       # (1, H) -> broadcast rows
    beta = beta_ref[...].astype(jnp.float32)
    # Fused normalize + affine written straight to the output tile.
    o_ref[...] = ((v - mean) * inv_std * gamma + beta).astype(o_ref.dtype)


def _pick_seq_tile(S, H, dtype_bytes=4, target_rows=512, max_tile_bytes=4 << 20):
    """Largest multiple-of-8 divisor of S under row/byte budgets (or S itself)."""
    rows_cap = max(8, min(target_rows, max_tile_bytes // max(1, H * dtype_bytes)))
    rows_cap -= rows_cap % 8
    if S <= rows_cap:
        return S                      # block == full dim along S: always legal
    ts = rows_cap
    while ts >= 8:
        if S % ts == 0:
            return ts
        ts -= 8
    return S                          # no clean divisor: fall back to full S


def positional_encoder(x, embed_weight, ln_gamma, ln_beta):
    """x: [B, S, H]; embed_weight: [max_seq_len, H]; ln_gamma/ln_beta: [H]."""
    B, S, H = x.shape
    # Positions are arange(S) for every batch element -> slice of the table.
    pos_emb = embed_weight[:S, :]                      # (S, H)
    gamma2d = ln_gamma.reshape(1, H)
    beta2d = ln_beta.reshape(1, H)

    ts = _pick_seq_tile(S, H, dtype_bytes=x.dtype.itemsize)
    grid = (B, pl.cdiv(S, ts))                         # ts divides S (or ts == S)

    return pl.pallas_call(
        _pos_encoder_kernel,
        out_shape=jax.ShapeDtypeStruct((B, S, H), x.dtype),
        grid_spec=pltpu.PrefetchScalarGridSpec(
            num_scalar_prefetch=0,
            grid=grid,
            in_specs=[
                # Batch dim squeezed -> kernel sees (TS, H).
                pl.BlockSpec((pl.Squeezed(), ts, H), lambda b, s: (b, s, 0)),
                pl.BlockSpec((ts, H), lambda b, s: (s, 0)),
                pl.BlockSpec((1, H), lambda b, s: (0, 0)),
                pl.BlockSpec((1, H), lambda b, s: (0, 0)),
            ],
            out_specs=pl.BlockSpec((pl.Squeezed(), ts, H), lambda b, s: (b, s, 0)),
        ),
        compiler_params=pltpu.CompilerParams(
            dimension_semantics=("parallel", "parallel")),
    )(x, pos_emb, gamma2d, beta2d)


def positional_encoder_ref(x, embed_weight, ln_gamma, ln_beta):
    """Pure-JAX reference mirroring the PyTorch forward (two-pass LayerNorm)."""
    B, S, H = x.shape
    pos_x = embed_weight[jnp.arange(S)][None, :, :]    # (1, S, H) -> broadcast B
    v = x + pos_x
    mean = jnp.mean(v, axis=-1, keepdims=True)
    var = jnp.mean((v - mean) ** 2, axis=-1, keepdims=True)
    y = (v - mean) / jnp.sqrt(var + LN_EPS)
    return y * ln_gamma + ln_beta


def _run_case(key, B, S, H, max_seq_len):
    k_x, k_emb = jax.random.split(key)
    x = jax.random.normal(k_x, (B, S, H), dtype=jnp.float32)
    # nn.Embedding default init: N(0, 1); nn.LayerNorm default: gamma=1, beta=0.
    embed_weight = jax.random.normal(k_emb, (max_seq_len, H), dtype=jnp.float32)
    ln_gamma = jnp.ones((H,), dtype=jnp.float32)
    ln_beta = jnp.zeros((H,), dtype=jnp.float32)

    out = jax.block_until_ready(
        positional_encoder(x, embed_weight, ln_gamma, ln_beta))
    ref = positional_encoder_ref(x, embed_weight, ln_gamma, ln_beta)
    assert out.shape == (B, S, H)
    assert jnp.allclose(out, ref, atol=1e-4, rtol=1e-4), (
        f"mismatch vs reference at B={B}, S={S}, H={H}")


if __name__ == "__main__":
    key = jax.random.PRNGKey(0)
    k0, k1 = jax.random.split(key)

    # Small module-consistent shape (single-tile path): batch=2, seq=8, hidden=32.
    _run_case(k0, B=2, S=8, H=32, max_seq_len=64)

    # Slightly larger, still-small shape exercising the S-tiled, lane-dense
    # multi-step pipeline (grid = (2, 2), TS = 512, H multiple of 128).
    _run_case(k1, B=2, S=1024, H=256, max_seq_len=1024)

    print("KERNEL_OK")
</pallas_src>

<mosaic_0001>
module attributes {stable_mosaic.version = 11 : i64} {
  func.func @_pos_encoder_kernel(%arg0: i32, %arg1: i32, %arg2: memref<1x8x32xf32, #tpu.memory_space<vmem>>, %arg3: memref<8x32xf32, #tpu.memory_space<vmem>>, %arg4: memref<1x32xf32, #tpu.memory_space<vmem>>, %arg5: memref<1x32xf32, #tpu.memory_space<vmem>>, %arg6: memref<1x8x32xf32, #tpu.memory_space<vmem>>) attributes {dimension_semantics = [#tpu.dimension_semantics<parallel>, #tpu.dimension_semantics<parallel>], iteration_bounds = array<i64: 2, 1>, scalar_prefetch = 0 : i64, scratch_operands = 0 : i64, tpu.core_type = #tpu.core_type<tc>, window_params = [{transform_indices = @transform_0, window_bounds = array<i64: 1, 8, 32>}, {transform_indices = @transform_1, window_bounds = array<i64: 8, 32>}, {pipeline_mode = #tpu.pipeline_mode<synchronous>, transform_indices = @transform_2, window_bounds = array<i64: 1, 32>}, {pipeline_mode = #tpu.pipeline_mode<synchronous>, transform_indices = @transform_3, window_bounds = array<i64: 1, 32>}, {transform_indices = @transform_4, window_bounds = array<i64: 1, 8, 32>}]} {
    %c0 = arith.constant 0 : index
    %c0_0 = arith.constant 0 : index
    %c0_1 = arith.constant 0 : index
    %0 = vector.load %arg2[%c0, %c0_0, %c0_1] : memref<1x8x32xf32, #tpu.memory_space<vmem>>, vector<1x8x32xf32>
    %1 = vector.shape_cast %0 : vector<1x8x32xf32> to vector<8x32xf32>
    %c0_2 = arith.constant 0 : index
    %c0_3 = arith.constant 0 : index
    %2 = vector.load %arg3[%c0_2, %c0_3] : memref<8x32xf32, #tpu.memory_space<vmem>>, vector<8x32xf32>
    %3 = arith.addf %1, %2 : vector<8x32xf32>
    %cst = arith.constant dense<0.000000e+00> : vector<8xf32>
    %4 = vector.multi_reduction <add>, %3, %cst [1] : vector<8x32xf32> to vector<8xf32>
    %5 = vector.shape_cast %4 : vector<8xf32> to vector<8x1xf32>
    %6 = arith.mulf %3, %3 : vector<8x32xf32>
    %cst_4 = arith.constant dense<0.000000e+00> : vector<8xf32>
    %7 = vector.multi_reduction <add>, %6, %cst_4 [1] : vector<8x32xf32> to vector<8xf32>
    %8 = vector.shape_cast %7 : vector<8xf32> to vector<8x1xf32>
    %cst_5 = arith.constant 3.125000e-02 : f32
    %9 = vector.broadcast %cst_5 : f32 to vector<8x1xf32>
    %10 = arith.mulf %5, %9 : vector<8x1xf32>
    %cst_6 = arith.constant 3.125000e-02 : f32
    %11 = vector.broadcast %cst_6 : f32 to vector<8x1xf32>
    %12 = arith.mulf %8, %11 : vector<8x1xf32>
    %13 = arith.mulf %10, %10 : vector<8x1xf32>
    %14 = arith.subf %12, %13 : vector<8x1xf32>
    %cst_7 = arith.constant 0.000000e+00 : f32
    %15 = vector.broadcast %cst_7 : f32 to vector<8x1xf32>
    %16 = arith.maximumf %14, %15 : vector<8x1xf32>
    %cst_8 = arith.constant 9.99999974E-6 : f32
    %17 = vector.broadcast %cst_8 : f32 to vector<8x1xf32>
    %18 = arith.addf %16, %17 : vector<8x1xf32>
    %19 = math.rsqrt %18 : vector<8x1xf32>
    %c0_9 = arith.constant 0 : index
    %c0_10 = arith.constant 0 : index
    %20 = vector.load %arg4[%c0_9, %c0_10] : memref<1x32xf32, #tpu.memory_space<vmem>>, vector<1x32xf32>
    %c0_11 = arith.constant 0 : index
    %c0_12 = arith.constant 0 : index
    %21 = vector.load %arg5[%c0_11, %c0_12] : memref<1x32xf32, #tpu.memory_space<vmem>>, vector<1x32xf32>
    %22 = vector.broadcast %10 : vector<8x1xf32> to vector<8x32xf32>
    %23 = arith.subf %3, %22 : vector<8x32xf32>
    %24 = vector.broadcast %19 : vector<8x1xf32> to vector<8x32xf32>
    %25 = arith.mulf %23, %24 : vector<8x32xf32>
    %26 = vector.broadcast %20 : vector<1x32xf32> to vector<8x32xf32>
    %27 = arith.mulf %25, %26 : vector<8x32xf32>
    %28 = vector.broadcast %21 : vector<1x32xf32> to vector<8x32xf32>
    %29 = arith.addf %27, %28 : vector<8x32xf32>
    %c0_13 = arith.constant 0 : index
    %c0_14 = arith.constant 0 : index
    %c0_15 = arith.constant 0 : index
    %30 = vector.load %arg6[%c0_13, %c0_14, %c0_15] : memref<1x8x32xf32, #tpu.memory_space<vmem>>, vector<1x8x32xf32>
    %31 = vector.shape_cast %30 : vector<1x8x32xf32> to vector<8x32xf32>
    %32 = vector.shape_cast %29 : vector<8x32xf32> to vector<1x8x32xf32>
    tpu.vector_store %arg6[%c0_13, %c0_14, %c0_15], %32 {strides = array<i32>} : memref<1x8x32xf32, #tpu.memory_space<vmem>>, vector<1x8x32xf32>,
    return
  }
  func.func @transform_0(%arg0: i32, %arg1: i32) -> (i32, i32, i32) {
    %c0_i32 = arith.constant 0 : i32
    %c0_i32_0 = arith.constant 0 : i32
    return %arg0, %arg1, %c0_i32 : i32, i32, i32
  }
  func.func @transform_1(%arg0: i32, %arg1: i32) -> (i32, i32) {
    %c0_i32 = arith.constant 0 : i32
    %c0_i32_0 = arith.constant 0 : i32
    return %arg1, %c0_i32 : i32, i32
  }
  func.func @transform_2(%arg0: i32, %arg1: i32) -> (i32, i32) {
    %c0_i32 = arith.constant 0 : i32
    %c0_i32_0 = arith.constant 0 : i32
    %c0_i32_1 = arith.constant 0 : i32
    return %c0_i32, %c0_i32_0 : i32, i32
  }
  func.func @transform_3(%arg0: i32, %arg1: i32) -> (i32, i32) {
    %c0_i32 = arith.constant 0 : i32
    %c0_i32_0 = arith.constant 0 : i32
    %c0_i32_1 = arith.constant 0 : i32
    return %c0_i32, %c0_i32_0 : i32, i32
  }
  func.func @transform_4(%arg0: i32, %arg1: i32) -> (i32, i32, i32) {
    %c0_i32 = arith.constant 0 : i32
    %c0_i32_0 = arith.constant 0 : i32
    return %arg0, %arg1, %c0_i32 : i32, i32, i32
  }
}

</mosaic_0001>

<bundles_post_ra>
// kernel: tpu_custom_call.1
= control target key start
LH: loop header
LB: loop body
LE: loop exit
PB: predicated region body
PF: predicated region fallthrough
CT: control target
= control target key end

     0   :  { %9 = vsyncpa [#allocation3], 0  ;;  %s828_s0 = inlined_call_operand.hbm [shape: f32[2,8,32], index: 0, kind: input, shape index: {}]   ;;  %s829_s1 = inlined_call_operand.hbm [shape: f32[8,32], index: 1, kind: input, shape index: {}]   ;;  %s830_s2 = inlined_call_operand.vmem [shape: f32[1,32], index: 2, kind: input, shape index: {}]   ;;  %s831_s3 = inlined_call_operand.vmem [shape: f32[1,32], index: 3, kind: input, shape index: {}]   ;;  %s832_s4 = inlined_call_operand.hbm [shape: f32[2,8,32], index: 4, kind: output, shape index: {}]  }
   0x1   :  { %11 = vsyncpa [#allocation3 + $0x1], 0 }
   0x2   :  { %12 = vsyncpa [#allocation6], 0 }
   0x3   :  { %13 = vsyncpa [#allocation4], 0 }
   0x4   :  { %15 = vsyncpa [#allocation4 + $0x1], 0  ;;  %s654_s15 = smov 0   ;;  %s656_s16 = smov 0  }
   0x5   :  { %s658_s17 = smov 0   ;;  %s660_s18 = smov 0  }
   0x6   :  { %s662_s19 = smov 0   ;;  %s664_s20 = smov 0  }
   0x7 LB: > { %s394_s21 = sadd.s32 4294967295, %s624_s20   ;;  %s395_s22 = sadd.s32 4294967294, %s624_s20   ;;  %s624_s20 = sphi %s664_s20, %s21_s20   ;;  %s620_s19 = sphi %s662_s19, %s849_s19   ;;  %s616_s18 = sphi %s660_s18, %s848_s18   ;;  %s612_s17 = sphi %s658_s17, %s847_s17   ;;  %s608_s16 = sphi %s656_s16, %s846_s16   ;;  %s604_s15 = sphi %s654_s15, %s845_s15  }
   0x8   : > { %p55_p0 = scmp.ne.s32.totalorder %s608_s16, %s604_s15  ;;  %p688_p1 = scmp.eq.s32.totalorder %s394_s21, 0 }
   0x9   : > { %p692_p2 = scmp.eq.s32.totalorder %s394_s21, 1  ;;  %p155_p3 = scmp.eq.s32.totalorder %s395_s22, 1 }
   0xa   : > { %p698_p4 = por %p688_p1, %p55_p0  ;;  %p396_p5 = scmp.ge.s32.totalorder %s624_s20, 1 }
   0xb   : > { %p703_p6 = por %p155_p3, %p55_p0  ;;  %p162_p7 = scmp.lt.s32.totalorder %s624_s20, 3 }
   0xc   : > { %s836_s25 = scalar_select %p698_p4, 1, 0 }
   0xd   : > { %s837_s26 = scalar_select %p703_p6, 1, 0 }
   0xe   : > { %p708_p8 = pnand %p396_p5, %p162_p7  ;;  %s626_s28 = smov [#allocation5]  }
   0xf   : > { %s177_s29 = sshll.u32 %s626_s28, 4  ;;  %s33_s5 = sadd.s32 1, %s620_s19  ;;  %s178_s29 = int_to_ptr.vmem [resolvable:$true] %s177_s29 }
  0x10   : > { %p419_p10 = pneg %p708_p8  ;;  %s42_s6 = sadd.s32 1, %s612_s17 }
  0x11   : > { %p35_p12 = scmp.ge.s32.totalorder %s33_s5, 2  ;;  %s497_s7 = scalar_lea.vmem %s178_s29, 128 }
  0x12   : > { %p717_p11 = pnand %p419_p10, %p688_p1  ;;  %p498_p0 = scmp.ne.s32.totalorder %s178_s29, %s497_s7 }
  0x13   : > { %p505_p7 = scmp.lt.s32.totalorder %s178_s29, %s178_s29  ;;  %p506_p6 = scmp.lt.s32.totalorder %s497_s7, %s497_s7 }
  0x14   : > { %p488_p13 = pneg %p717_p11 }
  0x15   : > { %p507_p9 = por %p506_p6, %p505_p7 }
  0x16   : > { %p500_p3 = pnand %p498_p0, %p488_p13 }
  0x18   : > { %p501_p5 = pneg %p500_p3 }
  0x1a   : > { %p508_p4 = pnand %p507_p9, %p501_p5 }
  0x1c   : > { %511 = shalt.err (!%p508_p4)
}
  0x1d   : > { %422 = dma.hbm_to_vmem [thread:$0]  (!%p717_p11), %s829_s1, 128, %s178_s29, [#allocation6]  }
  0x1e   : > { %s851_s5 = smov (%p35_p12, %s33_s5), 0  ;;  %p49_p6 = scmp.ne.s32.totalorder %s612_s17, %s608_s16 }
  0x1f   : > { %p50_p4 = scmp.eq.s32.totalorder %s624_s20, 0  ;;  %s37_s10 = ssub.s32 %s620_s19, %s851_s5 }
  0x20   : > { %p432_p9 = scmp.lt.s32.totalorder %s624_s20, 2  ;;  %p40_p10 = scmp.eq.s32.totalorder %s37_s10, 0 }
  0x21   : > { %p51_p13 = por %p50_p4, %p49_p6  ;;  %p740_p0 = por %p692_p2, %p49_p6 }
  0x22   : > { %s194_s12 = sand.u32 1, %s612_s17   ;;  %s400_s21 = sshll.u32 %s620_s19, 7 }
  0x23   : > { %s746_s13 = scalar_select %p40_p10, %s612_s17, %s42_s6  }
  0x24   : > { %s399_s14 = sshll.u32 %s194_s12, 3  ;;  %s204_s29 = scalar_lea.hbm %s828_s0, %s400_s21 }
  0x25   : > { %s198_s30 = scalar_lea.vmem [#allocation2], %s399_s14  ;;  %p752_p11 = pnand %p432_p9, %p51_p13 }
  0x26   : > { %s206_s7 = sshll.u32 %s198_s30, 4  ;;  %s195_s24 = scalar_lea.sflag [#allocation3], %s194_s12  ;;  %s207_s7 = int_to_ptr.vmem [resolvable:$true] %s206_s7 }
  0x27   : > { %p514_p2 = pneg %p752_p11  ;;  %s525_s9 = scalar_lea.vmem %s207_s7, 128 }
  0x28   : > { %p526_p12 = scmp.ne.s32.totalorder %s207_s7, %s525_s9  ;;  %s627_s6 = smov [#allocation2]  }
  0x29   : > { %s530_s10 = sshll.u32 %s627_s6, 4  ;;  %s531_s10 = int_to_ptr.vmem [resolvable:$false] %s530_s10 }
  0x2a   : > { %p528_p3 = pnand %p526_p12, %p514_p2  ;;  %s532_s22 = scalar_lea.vmem %s531_s10, 256 }
  0x2b   : > { %p533_p7 = scmp.lt.s32.totalorder %s207_s7, %s531_s10  ;;  %p534_p6 = scmp.lt.s32.totalorder %s532_s22, %s525_s9 }
  0x2c   : > { %p529_p5 = pneg %p528_p3 }
  0x2d   : > { %p535_p4 = por %p534_p6, %p533_p7 }
  0x2f   : > { %p536_p10 = pnand %p535_p4, %p529_p5 }
  0x31   : > { %539 = shalt.err (!%p536_p10)
}
  0x32   : > { %426 = dma.hbm_to_vmem [thread:$0]  (!%p752_p11), %s204_s29, 128, %s207_s7, %s195_s24  }
  0x33   : > { %215 = sbr.rel (%p708_p8) target bundleno = 246 (0xf6), region = 36  ;;  %s763_s12 = sand.u32 (!%p708_p8), 1, %s608_s16  }
  0x34   : > { %s402_s14 = sshll.u32 (!%p708_p8), %s763_s12, 3  ;;  %s218_s21 = scalar_lea.sflag (!%p708_p8), [#allocation3], %s763_s12 }
  0x35   : > { %s221_s28 = scalar_lea.vmem (!%p708_p8), [#allocation2], %s402_s14  ;;  %p842_p9 = scmp.ne.s32.totalorder (!%p708_p8), %s836_s25, 0 }
  0x38   : > { %591 = dma.done.wait (%p842_p9), %s218_s21, 128  }
  0x39   : > { %593 = vsyncadd (%p842_p9), %s218_s21, 4294967168 }
  0x3a   : > { %595 = dma.done.wait (%p688_p1), [#allocation6], 128  }
  0x3b   : > { %597 = vsyncadd (%p688_p1), [#allocation6], 4294967168  ;;  %v250_v0 = vld [vmem:[%s221_s28] sm:$0xff]  ;;  %v251_v1 = vld [vmem:[#allocation5] sm:$0xff]  ;;  %vm253_vm0 = vcmask 261120   ;;  %s408_s30 = sshll.u32 %s616_s18, 7 }
  0x3c   : > { %v252_v2 = vadd.f32 %v251_v1, %v250_v0  ;;  %v405_v16 = vld [vmem:[%s830_s2] ss:$0 sm:$0xff]  ;;  %s249_s7 = scalar_lea.vmem [#allocation7], %s402_s14  ;;  %s300_s6 = scalar_lea.hbm %s832_s4, %s408_s30 }
  0x3d   : > { %v406_v18 = vld [vmem:[%s831_s3] ss:$0 sm:$0xff]  ;;  %s302_s8 = sshll.u32 %s249_s7, 4  ;;  %s288_s10 = scalar_lea.sflag [#allocation4], %s763_s12  ;;  %s303_s8 = int_to_ptr.vmem [resolvable:$true] %s302_s8 }
  0x3e   : > { %v254_v3 = vsel %vm253_vm0, %v252_v2, 0.0  ;;  %v257_v4 = vmul.f32 %v252_v2, %v252_v2  ;;  %s540_s22 = scalar_lea.vmem %s303_s8, 128  ;;  %s628_s21 = smov [#allocation7]  }
  0x3f   : > { %255 = vadd.xlane.f32.xlu0 %v254_v3  ;;  %p541_p1 = scmp.ne.s32.totalorder %s303_s8, %s540_s22  ;;  %s544_s18 = sshll.u32 %s628_s21, 4  ;;  %s545_s18 = int_to_ptr.vmem [resolvable:$false] %s544_s18 }
  0x40   : > { %v258_v5 = vsel %vm253_vm0, %v257_v4, 0.0  ;;  %s546_s14 = scalar_lea.vmem %s545_s18, 256  ;;  %p547_p11 = scmp.lt.s32.totalorder %s303_s8, %s545_s18 }
  0x41   : > { %p542_p8 = pnand %p541_p1, %p740_p0  ;;  %p548_p2 = scmp.lt.s32.totalorder %s546_s14, %s540_s22 }
  0x43   : > { %259 = vadd.xlane.f32.xlu0 %v258_v5  ;;  %p543_p13 = pneg %p542_p8  ;;  %p549_p12 = por %p548_p2, %p547_p11 }
  0x45   : > { %p550_p3 = pnand %p549_p12, %p543_p13 }
  0xc8   : > { %v256_v6 = vpop.xlane.xlu0 %255 }
  0xc9   : > { %v261_v7 = vmul.f32 0.03125, %v256_v6 }
  0xcb   : > { %v263_v9 = vmul.f32 %v261_v7, %v261_v7  ;;  %v270_v14 = vsub.f32 %v252_v2, %v261_v7 }
  0xcc   : > { %v260_v8 = vpop.xlane.xlu0 %259 }
  0xcd   : > { %v262_v10 = vmul.f32 0.03125, %v260_v8 }
  0xcf   : > { %v264_v11 = vsub.f32 %v262_v10, %v263_v9 }
  0xd1   : > { %v265_v12 = vmax.f32 %v264_v11, 0.0 }
  0xd3   : > { %v266_v13 = vadd.f32 1e-05, %v265_v12 }
  0xd5   : > { %484 = vrsqrt.f32 %v266_v13 }
  0xe2   : > { %v485_v15 = vpop.eup %484 }
  0xe3   : > { %v271_v17 = vmul.f32 %v485_v15, %v270_v14 }
  0xe5   : > { %v278_v19 = vmul.f32 %v405_v16, %v271_v17 }
  0xe7   : > { %v285_v20 = vadd.f32 %v406_v18, %v278_v19 }
  0xe9   : > { %286 = vst.msk [vmem:[%s249_s7] sm:$0xff] %vm253_vm0, %v285_v20 }
  0xea   : > { %553 = shalt.err (!%p550_p3)
}
  0xeb   : > { %s554_s28 = scalar_lea.hbm %s300_s6, 128  ;;  %s558_s25 = scalar_lea.hbm %s832_s4, 256 }
  0xec   : > { %p555_p5 = scmp.ne.s32.totalorder %s300_s6, %s554_s28  ;;  %p559_p4 = scmp.lt.s32.totalorder %s300_s6, %s832_s4 }
  0xed   : > { %p560_p10 = scmp.lt.s32.totalorder %s558_s25, %s554_s28 }
  0xee   : > { %p556_p7 = pnand %p555_p5, %p740_p0 }
  0xef   : > { %p561_p9 = por %p560_p10, %p559_p4 }
  0xf0   : > { %p557_p6 = pneg %p556_p7 }
  0xf2   : > { %p562_p1 = pnand %p561_p9, %p557_p6 }
  0xf4   : > { %565 = shalt.err (!%p562_p1)
}
  0xf5   : > { %417 = dma.vmem_to_hbm [thread:$0]  (%p740_p0), %s303_s8, 128, %s300_s6, %s288_s10  }
  0xf6 PF: > { %s314_s30 = sand.u32 1, %s604_s15   ;;  %p843_p8 = scmp.ne.s32.totalorder %s837_s26, 0 }
  0xf7   : > { %p844_p13 = scmp.ge.s32.totalorder %s624_s20, 2  ;;  %s315_s7 = scalar_lea.sflag [#allocation4], %s314_s30 }
  0xf9   : > { %p428_p11 = pnand %p844_p13, %p843_p8 }
  0xfb   : > { %p429_p2 = pneg %p428_p11 }
  0xfd   : > { %599 = dma.done.wait (%p429_p2), %s315_s7, 128  }
  0xfe   : > { %601 = vsyncadd (%p429_p2), %s315_s7, 4294967168  ;;  %s21_s20 = sadd.s32 1, %s624_s20   ;;  %s845_s15 = smov %s608_s16 }
  0xff   : > { %p18_p12 = scmp.ge.s32.totalorder %s21_s20, 4   ;;  %s846_s16 = smov %s612_s17 }
 0x100   : > { %s847_s17 = smov %s746_s13  ;;  %s848_s18 = smov %s620_s19 }
 0x101   : > { %s849_s19 = smov %s851_s5  ;;  %20 = sbr.rel (!%p18_p12) target bundleno = 7 (0x7), region = 86 }
 0x106   :  { %320 = vsyncpa [#allocation3], 1 }
 0x107   :  { %322 = vsyncpa [#allocation3 + $0x1], 1 }
 0x108   :  { %323 = vsyncpa [#allocation6], 1 }
 0x109   :  { %324 = vsyncpa [#allocation4], 1 }
 0x10a   :  { %326 = vsyncpa [#allocation4 + $0x1], 1 }

</bundles_post_ra>
